<compile_context>
chip_gen: v6e
topology: v6e:2x2x1
jax: 0.10.0
libtpu: 0.0.40
codegen_flags: <defaults>
</compile_context>

<pallas_src>
import math
import jax
import jax.numpy as jnp
from jax.experimental import pallas as pl
from jax.experimental.pallas import tpu as pltpu


def _round_up(x, m):
    return ((x + m - 1) // m) * m


def _cdiv(a, b):
    return (a + b - 1) // b


# ----------------------------------------------------------------------------
# Fused kernel: adjacency @ (feat @ W1_k)  ->  +b1, tanh  ->  @ W2 + b2
# Grid: (row tiles ["parallel"], graph tiles ["arbitrary" reduction])
# ----------------------------------------------------------------------------
def encoder_fused_kernel(selfh_ref, adj_ref, g_ref, invd_ref,
                         b1_ref, w2_ref, b2_ref, o_ref, acc_ref):
    # selfh_ref : [TN, Dp]    f32   self_feats @ W1_self (precomputed)
    # adj_ref   : [K, TN, TG] int8  raw 0/1 adjacency tile
    # g_ref     : [K, TG, Dp] bf16  G_k = feat_table @ W1_neigh_k
    # invd_ref  : [K, TN, 1]  f32   1 / degree (post-matmul mean normalization)
    # b1_ref    : [1, Dp]     f32
    # w2_ref    : [Dp, Ep]    bf16
    # b2_ref    : [1, Ep]     f32
    # o_ref     : [TN, Ep]    f32   lane-dense output row tile
    # acc_ref   : [TN, Dp]    f32   scratch accumulator across the graph axis
    j = pl.program_id(1)
    num_adj = adj_ref.shape[0]

    @pl.when(j == 0)
    def _():
        acc_ref[...] = selfh_ref[...]            # init with self contribution

    acc = acc_ref[...]
    for k in range(num_adj):                     # static, tiny trip count
        contrib = jnp.dot(adj_ref[k].astype(g_ref.dtype), g_ref[k],
                          preferred_element_type=jnp.float32)
        acc = acc + contrib * invd_ref[k]        # f32 1/deg scaling post-matmul
    acc_ref[...] = acc

    @pl.when(j == pl.num_programs(1) - 1)
    def _():
        h = jnp.tanh(acc_ref[...] + b1_ref[...])             # bias + tanh in f32
        o_ref[...] = (jnp.dot(h.astype(w2_ref.dtype), w2_ref[...],
                              preferred_element_type=jnp.float32)
                      + b2_ref[...])


# ----------------------------------------------------------------------------
# Input preparation: gather-first, fold W1 into features, int8 adjacency,
# f32 inv-degree, zero-pad to lane-dense 128 multiples, adaptive tiles.
# ----------------------------------------------------------------------------
def _prepare_inputs(nodes, feat_table, adj_mats, w1, b1, w2, b2,
                    row_tile, graph_tile):
    n = nodes.shape[0]
    k = len(adj_mats)
    nt, d = feat_table.shape
    e = w2.shape[1]

    dp = _round_up(d, 128)                       # padded feature dim
    ep = _round_up(e, 128)                       # padded embed dim (lane dense)

    # adaptive row tile (multiple of 32 so the int8 adjacency tile is legal)
    n_row_tiles = _cdiv(n, row_tile)
    tn = _round_up(_cdiv(n, n_row_tiles), 32)
    np_ = _round_up(n, tn)

    # adaptive graph tile (multiple of 128)
    ntp = _round_up(nt, 128)
    n_g_tiles = _cdiv(ntp, graph_tile)
    tg = _round_up(_cdiv(ntp, n_g_tiles), 128)
    ntp = _round_up(ntp, tg)

    bf16 = jnp.bfloat16

    # gather-first: only the N requested rows of each adjacency are touched
    self_rows = feat_table[nodes]                                   # [N, D] f32
    adj_rows, inv_deg = [], []
    for adj in adj_mats:
        rows = adj[nodes].astype(jnp.float32)                       # [N, NT] 0/1
        deg = jnp.maximum(rows.sum(axis=1, keepdims=True), 1.0)
        inv_deg.append(1.0 / deg)                                   # f32
        adj_rows.append(rows.astype(jnp.int8))                      # raw 0/1 i8
    adj_rows = jnp.stack(adj_rows, axis=0)                          # [K, N, NT]
    inv_deg = jnp.stack(inv_deg, axis=0)                            # [K, N, 1]

    # fold W1 into features (wrapper-side, f32 accumulate, then bf16 for MXU)
    w1_blocks = [w1[i * d:(i + 1) * d, :] for i in range(k + 1)]    # (K+1)x[D,D]
    self_h = self_rows @ w1_blocks[0]                               # [N, D] f32
    g = jnp.stack([feat_table @ blk for blk in w1_blocks[1:]], 0)   # [K, NT, D]

    def pad2(x, r, c):
        return jnp.pad(x, ((0, r - x.shape[0]), (0, c - x.shape[1])))

    selfh_p = pad2(self_h, np_, dp)                                 # f32 [Np,Dp]
    adj_p = jnp.pad(adj_rows, ((0, 0), (0, np_ - n), (0, ntp - nt)))  # i8
    g_p = jnp.pad(g, ((0, 0), (0, ntp - nt), (0, dp - d))).astype(bf16)
    invd_p = jnp.pad(inv_deg, ((0, 0), (0, np_ - n), (0, 0)))       # f32
    b1_p = jnp.pad(b1, ((0, 0), (0, dp - d)))                       # f32 [1,Dp]
    w2_p = pad2(w2, dp, ep).astype(bf16)                            # [Dp, Ep]
    b2_p = jnp.pad(b2, ((0, 0), (0, ep - e)))                       # f32 [1,Ep]

    prepared = (selfh_p, adj_p, g_p, invd_p, b1_p, w2_p, b2_p)
    return prepared, (n, e, tn, tg)


# ----------------------------------------------------------------------------
# pallas_call wrapper
# ----------------------------------------------------------------------------
def encoder_mlp_fused(prepared, dims):
    selfh_p, adj_p, g_p, invd_p, b1_p, w2_p, b2_p = prepared
    n, e, tn, tg = dims
    np_, dp = selfh_p.shape
    k, _, ntp = adj_p.shape
    ep = w2_p.shape[1]

    grid = (np_ // tn, ntp // tg)

    out_p = pl.pallas_call(
        encoder_fused_kernel,
        out_shape=jax.ShapeDtypeStruct((np_, ep), jnp.float32),
        grid=grid,
        in_specs=[
            pl.BlockSpec((tn, dp), lambda i, j: (i, 0)),         # self @ W1_self
            pl.BlockSpec((k, tn, tg), lambda i, j: (0, i, j)),   # int8 adjacency
            pl.BlockSpec((k, tg, dp), lambda i, j: (0, j, 0)),   # G_k tiles
            pl.BlockSpec((k, tn, 1), lambda i, j: (0, i, 0)),    # 1 / degree
            pl.BlockSpec((1, dp), lambda i, j: (0, 0)),          # b1 (resident)
            pl.BlockSpec((dp, ep), lambda i, j: (0, 0)),         # W2 (resident)
            pl.BlockSpec((1, ep), lambda i, j: (0, 0)),          # b2 (resident)
        ],
        out_specs=pl.BlockSpec((tn, ep), lambda i, j: (i, 0)),
        scratch_shapes=[pltpu.VMEM((tn, dp), jnp.float32)],      # f32 accumulator
        compiler_params=pltpu.CompilerParams(
            dimension_semantics=("parallel", "arbitrary"),
        ),
    )(selfh_p, adj_p, g_p, invd_p, b1_p, w2_p, b2_p)
    return out_p[:n, :e]


def encoder_forward(nodes, feat_table, adj_mats, w1, b1, w2, b2,
                    row_tile=256, graph_tile=2048):
    prepared, dims = _prepare_inputs(nodes, feat_table, adj_mats,
                                     w1, b1, w2, b2, row_tile, graph_tile)
    return encoder_mlp_fused(prepared, dims)


# pure-JAX replica of the kernel's exact (bf16 matmul, f32 accumulate) numerics
def _kernel_numerics_ref(prepared, dims):
    selfh_p, adj_p, g_p, invd_p, b1_p, w2_p, b2_p = prepared
    n, e, _, _ = dims
    acc = selfh_p
    for kk in range(adj_p.shape[0]):
        contrib = jnp.dot(adj_p[kk].astype(g_p.dtype), g_p[kk],
                          preferred_element_type=jnp.float32)
        acc = acc + contrib * invd_p[kk]
    h = jnp.tanh(acc + b1_p)
    out = jnp.dot(h.astype(w2_p.dtype), w2_p,
                  preferred_element_type=jnp.float32) + b2_p
    return out[:n, :e]


# ----------------------------------------------------------------------------
# Deterministic parameter / input construction
# ----------------------------------------------------------------------------
def kaiming_normal(key, out_dim, in_dim):
    # matches torch.nn.init.kaiming_normal_ (fan_in, gain=sqrt(2)) for Linear
    std = math.sqrt(2.0 / in_dim)
    return jax.random.normal(key, (out_dim, in_dim), dtype=jnp.float32) * std


if __name__ == "__main__":
    key = jax.random.PRNGKey(0)
    k_feat, k_adj1, k_adj2, k_w1, k_b1, k_w2, k_b2 = jax.random.split(key, 7)

    num_total_nodes = 32     # graph size (embedding table rows)
    feature_dim = 32         # D
    embed_dim = 32           # E
    num_adj = 2              # len(adj_lists) -> concat dim = (K+1)*D = 96
    batch_nodes = 8          # N (nodes to encode)

    # feature table ("self.features" embedding)
    feat_table = jax.random.normal(k_feat, (num_total_nodes, feature_dim),
                                   dtype=jnp.float32)

    # two deterministic random adjacency matrices (dense 0/1)
    adj1 = (jax.random.uniform(k_adj1, (num_total_nodes, num_total_nodes)) < 0.2
            ).astype(jnp.float32)
    adj2 = (jax.random.uniform(k_adj2, (num_total_nodes, num_total_nodes)) < 0.2
            ).astype(jnp.float32)
    adj_mats = [adj1, adj2]

    # nonlinear_layer parameters (PyTorch Linear: weight [out, in], bias [out])
    in_dim = (num_adj + 1) * feature_dim
    w1_torch = kaiming_normal(k_w1, feature_dim, in_dim)            # [D, (K+1)D]
    bound1 = 1.0 / math.sqrt(in_dim)
    b1 = jax.random.uniform(k_b1, (1, feature_dim),
                            minval=-bound1, maxval=bound1, dtype=jnp.float32)
    w2_torch = kaiming_normal(k_w2, embed_dim, feature_dim)         # [E, D]
    bound2 = 1.0 / math.sqrt(feature_dim)
    b2 = jax.random.uniform(k_b2, (1, embed_dim),
                            minval=-bound2, maxval=bound2, dtype=jnp.float32)

    # store transposed (in x out) so the math is x @ W
    w1 = w1_torch.T      # [(K+1)D, D]
    w2 = w2_torch.T      # [D, E]

    # node indices to encode
    nodes = jnp.arange(batch_nodes, dtype=jnp.int32)

    out = encoder_forward(nodes, feat_table, adj_mats, w1, b1, w2, b2)
    out = jax.block_until_ready(out)
    assert out.shape == (batch_nodes, embed_dim)

    # (1) tight check against a pure-JAX replica of the kernel's bf16 numerics
    prepared, dims = _prepare_inputs(nodes, feat_table, adj_mats,
                                     w1, b1, w2, b2, row_tile=256,
                                     graph_tile=2048)
    ref_bf16 = _kernel_numerics_ref(prepared, dims)
    assert jnp.max(jnp.abs(out - ref_bf16)) < 3e-3

    # (2) loose check against full-f32 module semantics (bf16 MXU rounding only)
    self_feats = feat_table[nodes]
    neigh = []
    for adj in adj_mats:
        rows = adj[nodes]
        deg = jnp.maximum(rows.sum(axis=1, keepdims=True), 1.0)
        neigh.append((rows @ feat_table) / deg)
    combined = jnp.concatenate([self_feats] + neigh, axis=1)
    ref_f32 = jnp.tanh(combined @ w1 + b1) @ w2 + b2
    assert jnp.max(jnp.abs(out - ref_f32)) < 6e-2

    print("KERNEL_OK")
</pallas_src>

<mosaic_0001>
module attributes {stable_mosaic.version = 11 : i64} {
  func.func @encoder_fused_kernel(%arg0: i32, %arg1: i32, %arg2: memref<32x128xf32, #tpu.memory_space<vmem>>, %arg3: memref<2x32x128xi8, #tpu.memory_space<vmem>>, %arg4: memref<2x128x128xbf16, #tpu.memory_space<vmem>>, %arg5: memref<2x32x1xf32, #tpu.memory_space<vmem>>, %arg6: memref<1x128xf32, #tpu.memory_space<vmem>>, %arg7: memref<128x128xbf16, #tpu.memory_space<vmem>>, %arg8: memref<1x128xf32, #tpu.memory_space<vmem>>, %arg9: memref<32x128xf32, #tpu.memory_space<vmem>>, %arg10: memref<32x128xf32, #tpu.memory_space<vmem>>) attributes {dimension_semantics = [#tpu.dimension_semantics<parallel>, #tpu.dimension_semantics<arbitrary>], iteration_bounds = array<i64: 1, 1>, scalar_prefetch = 0 : i64, scratch_operands = 1 : i64, tpu.core_type = #tpu.core_type<tc>, window_params = [{transform_indices = @transform_0, window_bounds = array<i64: 32, 128>}, {transform_indices = @transform_1, window_bounds = array<i64: 2, 32, 128>}, {transform_indices = @transform_2, window_bounds = array<i64: 2, 128, 128>}, {transform_indices = @transform_3, window_bounds = array<i64: 2, 32, 1>}, {pipeline_mode = #tpu.pipeline_mode<synchronous>, transform_indices = @transform_4, window_bounds = array<i64: 1, 128>}, {pipeline_mode = #tpu.pipeline_mode<synchronous>, transform_indices = @transform_5, window_bounds = array<i64: 128, 128>}, {pipeline_mode = #tpu.pipeline_mode<synchronous>, transform_indices = @transform_6, window_bounds = array<i64: 1, 128>}, {transform_indices = @transform_7, window_bounds = array<i64: 32, 128>}]} {
    %c0_i32 = arith.constant 0 : i32
    %0 = arith.cmpi eq, %arg1, %c0_i32 : i32
    %1 = arith.extui %0 : i1 to i32
    %c0_i32_0 = arith.constant 0 : i32
    %2 = arith.cmpi ne, %1, %c0_i32_0 : i32
    scf.if %2 {
      %c0_24 = arith.constant 0 : index
      %c0_25 = arith.constant 0 : index
      %30 = vector.load %arg2[%c0_24, %c0_25] : memref<32x128xf32, #tpu.memory_space<vmem>>, vector<32x128xf32>
      %c0_26 = arith.constant 0 : index
      %c0_27 = arith.constant 0 : index
      %31 = vector.load %arg10[%c0_26, %c0_27] : memref<32x128xf32, #tpu.memory_space<vmem>>, vector<32x128xf32>
      tpu.vector_store %arg10[%c0_26, %c0_27], %30 {strides = array<i32>} : memref<32x128xf32, #tpu.memory_space<vmem>>, vector<32x128xf32>,
    } else {
    }
    %c0 = arith.constant 0 : index
    %c0_1 = arith.constant 0 : index
    %3 = vector.load %arg10[%c0, %c0_1] : memref<32x128xf32, #tpu.memory_space<vmem>>, vector<32x128xf32>
    %c0_2 = arith.constant 0 : index
    %c0_3 = arith.constant 0 : index
    %c0_4 = arith.constant 0 : index
    %4 = vector.load %arg3[%c0_2, %c0_3, %c0_4] : memref<2x32x128xi8, #tpu.memory_space<vmem>>, vector<1x32x128xi8>
    %5 = vector.shape_cast %4 : vector<1x32x128xi8> to vector<32x128xi8>
    %6 = arith.sitofp %5 : vector<32x128xi8> to vector<32x128xbf16>
    %c0_5 = arith.constant 0 : index
    %c0_6 = arith.constant 0 : index
    %c0_7 = arith.constant 0 : index
    %7 = vector.load %arg4[%c0_5, %c0_6, %c0_7] : memref<2x128x128xbf16, #tpu.memory_space<vmem>>, vector<1x128x128xbf16>
    %8 = vector.shape_cast %7 : vector<1x128x128xbf16> to vector<128x128xbf16>
    %cst = arith.constant dense<0.000000e+00> : vector<32x128xf32>
    %9 = tpu.matmul %6, %8, %cst {dimension_numbers = #tpu.dot_dimension_numbers<[1], [0], [0], [1], [0, 0, 1, 1], [], []>} : vector<32x128xbf16>, vector<128x128xbf16>, vector<32x128xf32> -> vector<32x128xf32>
    %c0_8 = arith.constant 0 : index
    %c0_9 = arith.constant 0 : index
    %c0_10 = arith.constant 0 : index
    %10 = vector.load %arg5[%c0_8, %c0_9, %c0_10] : memref<2x32x1xf32, #tpu.memory_space<vmem>>, vector<1x32x1xf32>
    %11 = vector.shape_cast %10 : vector<1x32x1xf32> to vector<32x1xf32>
    %12 = vector.broadcast %11 : vector<32x1xf32> to vector<32x128xf32>
    %13 = arith.mulf %9, %12 : vector<32x128xf32>
    %14 = arith.addf %3, %13 : vector<32x128xf32>
    %c1 = arith.constant 1 : index
    %c0_11 = arith.constant 0 : index
    %c0_12 = arith.constant 0 : index
    %15 = vector.load %arg3[%c1, %c0_11, %c0_12] : memref<2x32x128xi8, #tpu.memory_space<vmem>>, vector<1x32x128xi8>
    %16 = vector.shape_cast %15 : vector<1x32x128xi8> to vector<32x128xi8>
    %17 = arith.sitofp %16 : vector<32x128xi8> to vector<32x128xbf16>
    %c1_13 = arith.constant 1 : index
    %c0_14 = arith.constant 0 : index
    %c0_15 = arith.constant 0 : index
    %18 = vector.load %arg4[%c1_13, %c0_14, %c0_15] : memref<2x128x128xbf16, #tpu.memory_space<vmem>>, vector<1x128x128xbf16>
    %19 = vector.shape_cast %18 : vector<1x128x128xbf16> to vector<128x128xbf16>
    %cst_16 = arith.constant dense<0.000000e+00> : vector<32x128xf32>
    %20 = tpu.matmul %17, %19, %cst_16 {dimension_numbers = #tpu.dot_dimension_numbers<[1], [0], [0], [1], [0, 0, 1, 1], [], []>} : vector<32x128xbf16>, vector<128x128xbf16>, vector<32x128xf32> -> vector<32x128xf32>
    %c1_17 = arith.constant 1 : index
    %c0_18 = arith.constant 0 : index
    %c0_19 = arith.constant 0 : index
    %21 = vector.load %arg5[%c1_17, %c0_18, %c0_19] : memref<2x32x1xf32, #tpu.memory_space<vmem>>, vector<1x32x1xf32>
    %22 = vector.shape_cast %21 : vector<1x32x1xf32> to vector<32x1xf32>
    %23 = vector.broadcast %22 : vector<32x1xf32> to vector<32x128xf32>
    %24 = arith.mulf %20, %23 : vector<32x128xf32>
    %25 = arith.addf %14, %24 : vector<32x128xf32>
    %c0_20 = arith.constant 0 : index
    %c0_21 = arith.constant 0 : index
    %26 = vector.load %arg10[%c0_20, %c0_21] : memref<32x128xf32, #tpu.memory_space<vmem>>, vector<32x128xf32>
    tpu.vector_store %arg10[%c0_20, %c0_21], %25 {strides = array<i32>} : memref<32x128xf32, #tpu.memory_space<vmem>>, vector<32x128xf32>,
    %c0_i32_22 = arith.constant 0 : i32
    %27 = arith.cmpi eq, %arg1, %c0_i32_22 : i32
    %28 = arith.extui %27 : i1 to i32
    %c0_i32_23 = arith.constant 0 : i32
    %29 = arith.cmpi ne, %28, %c0_i32_23 : i32
    scf.if %29 {
      %c0_24 = arith.constant 0 : index
      %c0_25 = arith.constant 0 : index
      %30 = vector.load %arg10[%c0_24, %c0_25] : memref<32x128xf32, #tpu.memory_space<vmem>>, vector<32x128xf32>
      %c0_26 = arith.constant 0 : index
      %c0_27 = arith.constant 0 : index
      %31 = vector.load %arg6[%c0_26, %c0_27] : memref<1x128xf32, #tpu.memory_space<vmem>>, vector<1x128xf32>
      %32 = vector.broadcast %31 : vector<1x128xf32> to vector<32x128xf32>
      %33 = arith.addf %30, %32 : vector<32x128xf32>
      %34 = math.tanh %33 : vector<32x128xf32>
      %35 = arith.truncf %34 : vector<32x128xf32> to vector<32x128xbf16>
      %c0_28 = arith.constant 0 : index
      %c0_29 = arith.constant 0 : index
      %36 = vector.load %arg7[%c0_28, %c0_29] : memref<128x128xbf16, #tpu.memory_space<vmem>>, vector<128x128xbf16>
      %cst_30 = arith.constant dense<0.000000e+00> : vector<32x128xf32>
      %37 = tpu.matmul %35, %36, %cst_30 {dimension_numbers = #tpu.dot_dimension_numbers<[1], [0], [0], [1], [0, 0, 1, 1], [], []>} : vector<32x128xbf16>, vector<128x128xbf16>, vector<32x128xf32> -> vector<32x128xf32>
      %c0_31 = arith.constant 0 : index
      %c0_32 = arith.constant 0 : index
      %38 = vector.load %arg8[%c0_31, %c0_32] : memref<1x128xf32, #tpu.memory_space<vmem>>, vector<1x128xf32>
      %39 = vector.broadcast %38 : vector<1x128xf32> to vector<32x128xf32>
      %40 = arith.addf %37, %39 : vector<32x128xf32>
      %c0_33 = arith.constant 0 : index
      %c0_34 = arith.constant 0 : index
      %41 = vector.load %arg9[%c0_33, %c0_34] : memref<32x128xf32, #tpu.memory_space<vmem>>, vector<32x128xf32>
      tpu.vector_store %arg9[%c0_33, %c0_34], %40 {strides = array<i32>} : memref<32x128xf32, #tpu.memory_space<vmem>>, vector<32x128xf32>,
    } else {
    }
    return
  }
  func.func @transform_0(%arg0: i32, %arg1: i32) -> (i32, i32) {
    %c0_i32 = arith.constant 0 : i32
    %c0_i32_0 = arith.constant 0 : i32
    return %arg0, %c0_i32 : i32, i32
  }
  func.func @transform_1(%arg0: i32, %arg1: i32) -> (i32, i32, i32) {
    %c0_i32 = arith.constant 0 : i32
    %c0_i32_0 = arith.constant 0 : i32
    return %c0_i32, %arg0, %arg1 : i32, i32, i32
  }
  func.func @transform_2(%arg0: i32, %arg1: i32) -> (i32, i32, i32) {
    %c0_i32 = arith.constant 0 : i32
    %c0_i32_0 = arith.constant 0 : i32
    %c0_i32_1 = arith.constant 0 : i32
    return %c0_i32, %arg1, %c0_i32_0 : i32, i32, i32
  }
  func.func @transform_3(%arg0: i32, %arg1: i32) -> (i32, i32, i32) {
    %c0_i32 = arith.constant 0 : i32
    %c0_i32_0 = arith.constant 0 : i32
    %c0_i32_1 = arith.constant 0 : i32
    return %c0_i32, %arg0, %c0_i32_0 : i32, i32, i32
  }
  func.func @transform_4(%arg0: i32, %arg1: i32) -> (i32, i32) {
    %c0_i32 = arith.constant 0 : i32
    %c0_i32_0 = arith.constant 0 : i32
    %c0_i32_1 = arith.constant 0 : i32
    return %c0_i32, %c0_i32_0 : i32, i32
  }
  func.func @transform_5(%arg0: i32, %arg1: i32) -> (i32, i32) {
    %c0_i32 = arith.constant 0 : i32
    %c0_i32_0 = arith.constant 0 : i32
    %c0_i32_1 = arith.constant 0 : i32
    return %c0_i32, %c0_i32_0 : i32, i32
  }
  func.func @transform_6(%arg0: i32, %arg1: i32) -> (i32, i32) {
    %c0_i32 = arith.constant 0 : i32
    %c0_i32_0 = arith.constant 0 : i32
    %c0_i32_1 = arith.constant 0 : i32
    return %c0_i32, %c0_i32_0 : i32, i32
  }
  func.func @transform_7(%arg0: i32, %arg1: i32) -> (i32, i32) {
    %c0_i32 = arith.constant 0 : i32
    %c0_i32_0 = arith.constant 0 : i32
    return %arg0, %c0_i32 : i32, i32
  }
}

</mosaic_0001>

<bundles_post_ra>
// kernel: tpu_custom_call.1
= control target key start
LH: loop header
LB: loop body
LE: loop exit
PB: predicated region body
PF: predicated region fallthrough
CT: control target
= control target key end

     0   :  { %12 = vsyncpa [#allocation4], 0  ;;  %s927_s0 = inlined_call_operand.hbm [shape: f32[32,128], index: 0, kind: input, shape index: {}]   ;;  %s928_s1 = inlined_call_operand.hbm [shape: s8[2,32,128], index: 1, kind: input, shape index: {}]   ;;  %s929_s2 = inlined_call_operand.hbm [shape: bf16[2,128,128], index: 2, kind: input, shape index: {}]   ;;  %s930_s3 = inlined_call_operand.vmem [shape: f32[2,32,1], index: 3, kind: input, shape index: {}]   ;;  %s931_s4 = inlined_call_operand.vmem [shape: f32[1,128], index: 4, kind: input, shape index: {}]   ;;  %s932_s5 = inlined_call_operand.vmem [shape: bf16[128,128], index: 5, kind: input, shape index: {}]   ;;  %s933_s6 = inlined_call_operand.vmem [shape: f32[1,128], index: 6, kind: input, shape index: {}]   ;;  %s934_s7 = inlined_call_operand.hbm [shape: f32[32,128], index: 7, kind: output, shape index: {}]  }
   0x1   :  { %13 = vsyncpa [#allocation7], 0 }
   0x2   :  { %14 = vsyncpa [#allocation5], 0  ;;  %s803_s24 = smov [#allocation6]   ;;  %s804_s26 = smov [#allocation3]  }
   0x3   :  { %s32_s25 = sshll.u32 %s803_s24, 4  ;;  %s20_s27 = sshll.u32 %s804_s26, 4  ;;  %s33_s25 = int_to_ptr.vmem [resolvable:$true] %s32_s25  ;;  %s21_s27 = int_to_ptr.vmem [resolvable:$true] %s20_s27 }
   0x4   :  { %s725_s28 = scalar_lea.vmem %s33_s25, 256  ;;  %p730_p1 = scmp.lt.s32.totalorder %s33_s25, %s33_s25 }
   0x5   :  { %p726_p0 = scmp.ne.s32.totalorder %s33_s25, %s725_s28  ;;  %p731_p2 = scmp.lt.s32.totalorder %s725_s28, %s725_s28 }
   0x7   :  { %p732_p3 = por %p731_p2, %p730_p1 }
   0x9   :  { %p733_p4 = pnand %p732_p3, %p726_p0 }
   0xb   :  { %736 = shalt.err (!%p733_p4)
}
   0xc   :  { %s805_s29 = smov 128   ;;  %s806_s30 = smov 8  }
   0xd   :  { %38 = dma.hbm_to_vmem [thread:$0]  %s928_s1, 256, %s33_s25, [#allocation7], %s805_s29, %s805_s29, %s806_s30  }
   0xe   :  { %s745_s10 = scalar_lea.vmem %s21_s27, 512  ;;  %p750_p6 = scmp.lt.s32.totalorder %s21_s27, %s21_s27 }
   0xf   :  { %p746_p5 = scmp.ne.s32.totalorder %s21_s27, %s745_s10  ;;  %p751_p7 = scmp.lt.s32.totalorder %s745_s10, %s745_s10 }
  0x11   :  { %p752_p8 = por %p751_p7, %p750_p6 }
  0x13   :  { %p753_p9 = pnand %p752_p8, %p746_p5 }
  0x15   :  { %756 = shalt.err (!%p753_p9)
}
  0x16   :  { %26 = dma.hbm_to_vmem [thread:$0]  %s927_s0, 512, %s21_s27, [#allocation4], %s805_s29, %s805_s29, %s806_s30  }
  0x17   :  { %s807_s13 = smov [#allocation8]  }
  0x18   :  { %s44_s14 = sshll.u32 %s807_s13, 4  ;;  %s45_s14 = int_to_ptr.vmem [resolvable:$true] %s44_s14 }
  0x19   :  { %s765_s15 = scalar_lea.vmem %s45_s14, 2048  ;;  %p770_p11 = scmp.lt.s32.totalorder %s45_s14, %s45_s14 }
  0x1a   :  { %p766_p10 = scmp.ne.s32.totalorder %s45_s14, %s765_s15  ;;  %p771_p12 = scmp.lt.s32.totalorder %s765_s15, %s765_s15 }
  0x1c   :  { %p772_p13 = por %p771_p12, %p770_p11 }
  0x1e   :  { %p773_p0 = pnand %p772_p13, %p766_p10 }
  0x20   :  { %776 = shalt.err (!%p773_p0)
}
  0x21   :  { %s808_s1 = smov 64   ;;  %s809_s16 = smov 4  }
  0x22   :  { %50 = dma.hbm_to_vmem [thread:$0]  %s929_s2, 2048, %s45_s14, [#allocation7], %s808_s1, %s808_s1, %s809_s16  }
  0x23   :  { %797 = dma.done.wait [#allocation4], 512  }
  0x24   :  { %798 = vsyncadd [#allocation4], 4294966784 }
  0x25   :  { %799 = dma.done.wait [#allocation7], 2304  }
  0x26   :  { %800 = vsyncadd [#allocation7], 4294964992  ;;  %v810_v0 = vmov 0   ;;  %v685_v1 = vld [vmem:[#allocation8 + $0x38] sm:$0xff]   ;;  %v687_v3 = vld [vmem:[#allocation8 + $0x30] sm:$0xff]   ;;  %s811_s26 = smov [#allocation9]  }
  0x27   :  { %684 = vset.pattern.permute.xlu1 %v810_v0  ;;  %683 = vset.pattern.permute.xlu0 %v810_v0  ;;  %v686_v2 = vld [vmem:[#allocation8 + $0x78] sm:$0xff]   ;;  %v688_v4 = vld [vmem:[#allocation8 + $0x70] sm:$0xff]   ;;  %v689_v5 = vld [vmem:[#allocation8 + $0x28] sm:$0xff]   ;;  %s541_s27 = sshll.u32 %s811_s26, 4  ;;  %s542_s27 = int_to_ptr.vmem [resolvable:$true] %s541_s27 }
  0x28   :  { %614 = vmatprep.subr.bf16.mxu0 %v685_v1  ;;  %634 = vmatprep.subr.bf16.mxu1 %v686_v2  ;;  %v690_v6 = vld [vmem:[#allocation8 + $0x68] sm:$0xff]   ;;  %v691_v7 = vld [vmem:[#allocation8 + $0x20] sm:$0xff]   ;;  %v693_v9 = vld [vmem:[#allocation8 + $0x18] sm:$0xff]   ;;  %s777_s28 = scalar_lea.vmem %s542_s27, 512  ;;  %p782_p2 = scmp.lt.s32.totalorder %s542_s27, %s542_s27 }
  0x29   :  { %615 = vmatpush3.bf16.msra.mxu0 %v685_v1  ;;  %635 = vmatpush3.bf16.msra.mxu1 %v686_v2  ;;  %v692_v8 = vld [vmem:[#allocation8 + $0x60] sm:$0xff]   ;;  %v694_v10 = vld [vmem:[#allocation8 + $0x58] sm:$0xff]   ;;  %v695_v11 = vld [vmem:[#allocation8 + $0x10] sm:$0xff]   ;;  %p778_p1 = scmp.ne.s32.totalorder %s542_s27, %s777_s28  ;;  %p783_p3 = scmp.lt.s32.totalorder %s777_s28, %s777_s28 }
  0x2a   :  { %616 = vmatprep.subr.bf16.mxu0 %v687_v3  ;;  %636 = vmatprep.subr.bf16.mxu1 %v688_v4  ;;  %v85_v12 = vld [vmem:[#allocation6] sm:$0xff]  ;;  %v234_v13 = vld [vmem:[#allocation6 + $0x8] sm:$0xff]  ;;  %v203_v14 = vld [vmem:[%s930_s3 + $0x10] sm:$0xff] }
  0x2b   :  { %v696_v15 = vld [vmem:[#allocation8 + $0x50] sm:$0xff]   ;;  %v86_v16 = vunpack.c.l.s8.bf16 %v85_v12  ;;  %v235_v17 = vunpack.c.l.s8.bf16 %v234_v13  ;;  %217 = vperm.xlu1 %684, %v203_v14   ;;  %v697_v19 = vld [vmem:[#allocation8 + $0x8] sm:$0xff]   ;;  %v202_v22 = vld [vmem:[%s930_s3 + $0x8] sm:$0xff]  ;;  %v87_v29 = vunpack.c.h.s8.bf16 %v85_v12  ;;  %v236_v30 = vunpack.c.h.s8.bf16 %v234_v13  ;;  %p784_p4 = por %p783_p3, %p782_p2 }
  0x2c   :  { %v201_v18 = vld [vmem:[%s930_s3] sm:$0xff]  ;;  %v204_v20 = vld [vmem:[%s930_s3 + $0x18] sm:$0xff]  ;;  %v571_v23 = vld [vmem:[%s930_s3 + $0x28] sm:$0xff] }
  0x2d   :  { %617 = vmatpush3.bf16.msra.mxu0 %v687_v3  ;;  %637 = vmatpush3.bf16.msra.mxu1 %v688_v4  ;;  %v698_v21 = vld [vmem:[#allocation8 + $0x48] sm:$0xff]   ;;  %v570_v24 = vld [vmem:[%s930_s3 + $0x20] sm:$0xff]  ;;  %v699_v25 = vld [vmem:[#allocation8] sm:$0xff]   ;;  %p785_p5 = pnand %p784_p4, %p778_p1 }
  0x2e   :  { %618 = vmatprep.subr.bf16.mxu0 %v689_v5  ;;  %638 = vmatprep.subr.bf16.mxu1 %v690_v6  ;;  %v700_v26 = vld [vmem:[#allocation8 + $0x40] sm:$0xff]   ;;  %v573_v27 = vld [vmem:[%s930_s3 + $0x38] sm:$0xff]  ;;  %v703_v33 = vld [vmem:[%s932_s5 + $0x28] sm:$0xff]  }
  0x2f   :  { %207 = vperm.xlu0 %683, %v201_v18   ;;  %630 = vmatprep.mubr.bf16.mxu0 %v86_v16  ;;  %v572_v28 = vld [vmem:[%s930_s3 + $0x30] sm:$0xff]  ;;  %v701_v31 = vld [vmem:[%s932_s5 + $0x38] sm:$0xff]   ;;  %v704_v34 = vld [vmem:[%s932_s5 + $0x20] sm:$0xff]  }
  0x30   :  { %650 = vmatprep.mubr.bf16.mxu1 %v235_v17  ;;  %222 = vperm.xlu1 %684, %v204_v20   ;;  %v702_v32 = vld [vmem:[%s932_s5 + $0x30] sm:$0xff]   ;;  %v705_v35 = vld [vmem:[%s932_s5 + $0x18] sm:$0xff]   ;;  %v707_v37 = vld [vmem:[%s932_s5 + $0x8] sm:$0xff]  }
  0x31   :  { %619 = vmatpush3.bf16.msra.mxu0 %v689_v5  ;;  %639 = vmatpush3.bf16.msra.mxu1 %v690_v6  ;;  %v706_v36 = vld [vmem:[%s932_s5 + $0x10] sm:$0xff]   ;;  %v708_v38 = vld [vmem:[%s932_s5] sm:$0xff]   ;;  %v76_v54 = vld [vmem:[#allocation3 + $0x18] sm:$0xff] }
  0x32   :  { %620 = vmatprep.subr.bf16.mxu0 %v691_v7  ;;  %640 = vmatprep.subr.bf16.mxu1 %v692_v8  ;;  %v75_v46 = vld [vmem:[#allocation3 + $0x10] sm:$0xff]  ;;  %v73_v49 = vld [vmem:[#allocation3] sm:$0xff]  ;;  %v74_v63 = vld [vmem:[#allocation3 + $0x8] sm:$0xff] }
  0x33   :  { %212 = vperm.xlu0 %683, %v202_v22   ;;  %v575_v22 = vld [vmem:[%s933_s6] ss:$0 sm:$0xff] }
  0x34   :  { %363 = vperm.xlu1 %684, %v571_v23  }
  0x35   :  { %621 = vmatpush3.bf16.msra.mxu0 %v691_v7  ;;  %641 = vmatpush3.bf16.msra.mxu1 %v692_v8  ;;  %v574_v7 = vld [vmem:[%s931_s4] ss:$0 sm:$0xff] }
  0x36   :  { %622 = vmatprep.subr.bf16.mxu0 %v693_v9  ;;  %642 = vmatprep.subr.bf16.mxu1 %v694_v10 }
  0x37   :  { %358 = vperm.xlu0 %683, %v570_v24  }
  0x38   :  { %373 = vperm.xlu1 %684, %v573_v27  }
  0x39   :  { %623 = vmatpush3.bf16.msra.mxu0 %v693_v9  ;;  %643 = vmatpush3.bf16.msra.mxu1 %v694_v10 }
  0x3a   :  { %624 = vmatprep.subr.bf16.mxu0 %v695_v11  ;;  %644 = vmatprep.subr.bf16.mxu1 %v696_v15 }
  0x3b   :  { %368 = vperm.xlu0 %683, %v572_v28  }
  0x3d   :  { %625 = vmatpush3.bf16.msra.mxu0 %v695_v11  ;;  %645 = vmatpush3.bf16.msra.mxu1 %v696_v15 }
  0x3e   :  { %626 = vmatprep.subr.bf16.mxu0 %v697_v19  ;;  %646 = vmatprep.subr.bf16.mxu1 %v698_v21 }
  0x41   :  { %627 = vmatpush3.bf16.msra.mxu0 %v697_v19  ;;  %647 = vmatpush3.bf16.msra.mxu1 %v698_v21 }
  0x42   :  { %628 = vmatprep.subr.bf16.mxu0 %v699_v25  ;;  %648 = vmatprep.subr.bf16.mxu1 %v700_v26 }
  0x45   :  { %629 = vmatpush3.bf16.msra.mxu0 %v699_v25  ;;  %649 = vmatpush3.bf16.msra.mxu1 %v700_v26 }
  0x46   :  { %654 = vmatprep.subr.bf16.mxu0 %v701_v31 }
  0x48   :  { %631 = vmatmul.mubr.bf16.vlgmr.msra.gmra.mxu0 %v87_v29  ;;  %651 = vmatmul.mubr.bf16.vlgmr.msra.gmra.mxu1 %v236_v30 }
  0x49   :  { %655 = vmatpush3.bf16.msra.mxu0 %v701_v31 }
  0x4a   :  { %656 = vmatprep.subr.bf16.mxu0 %v702_v32 }
  0x4d   :  { %657 = vmatpush3.bf16.msra.mxu0 %v702_v32 }
  0x4e   :  { %658 = vmatprep.subr.bf16.mxu0 %v703_v33 }
  0x51   :  { %659 = vmatpush3.bf16.msra.mxu0 %v703_v33 }
  0x52   :  { %660 = vmatprep.subr.bf16.mxu0 %v704_v34 }
  0x55   :  { %661 = vmatpush3.bf16.msra.mxu0 %v704_v34 }
  0x56   :  { %662 = vmatprep.subr.bf16.mxu0 %v705_v35 }
  0x59   :  { %663 = vmatpush3.bf16.msra.mxu0 %v705_v35 }
  0x5a   :  { %664 = vmatprep.subr.bf16.mxu0 %v706_v36 }
  0x5d   :  { %665 = vmatpush3.bf16.msra.mxu0 %v706_v36 }
  0x5e   :  { %666 = vmatprep.subr.bf16.mxu0 %v707_v37 }
  0x61   :  { %667 = vmatpush3.bf16.msra.mxu0 %v707_v37 }
  0x62   :  { %668 = vmatprep.subr.bf16.mxu0 %v708_v38 }
  0x65   :  { %669 = vmatpush3.bf16.msra.mxu0 %v708_v38 }
  0xa6   :  { %v218_v40 = vpop.permute.xlu1 %217 }
  0xaa   :  { %v208_v39 = vpop.permute.xlu0 %207 }
  0xab   :  { %v223_v42 = vpop.permute.xlu1 %222 }
  0xae   :  { %v213_v41 = vpop.permute.xlu0 %212 }
  0xaf   :  { %v364_v44 = vpop.permute.xlu1 %363 }
  0xb2   :  { %v359_v43 = vpop.permute.xlu0 %358 }
  0xb3   :  { %v374_v61 = vpop.permute.xlu1 %373 }
  0xb6   :  { %v369_v56 = vpop.permute.xlu0 %368 }
 0x108   :  { %v632_v45 = vpop.f32.mrf.mxu0  ;;  %v652_v48 = vpop.f32.mrf.mxu1 }
 0x109   :  { %v227_v47 = vmul.f32 %v632_v45, %v218_v40  ;;  %v378_v62 = vmul.f32 %v652_v48, %v369_v56 }
 0x10a   :  { %v186_v50 = vpop.f32.mrf.mxu0  ;;  %v336_v52 = vpop.f32.mrf.mxu1 }
 0x10b   :  { %v225_v51 = vmul.f32 %v208_v39, %v186_v50  ;;  %v231_v53 = vadd.f32 %v227_v47, %v75_v46  ;;  %v376_v58 = vmul.f32 %v359_v43, %v336_v52 }
 0x10c   :  { %v633_v55 = vpop.f32.mrf.mxu0  ;;  %v653_v60 = vpop.f32.mrf.mxu1 }
 0x10d   :  { %v229_v57 = vadd.f32 %v225_v51, %v73_v49  ;;  %v228_v59 = vmul.f32 %v633_v55, %v223_v42  ;;  %v379_v3 = vmul.f32 %v653_v60, %v374_v61  ;;  %v382_v6 = vadd.f32 %v378_v62, %v231_v53 }
 0x10e   :  { %v189_v0 = vpop.f32.mrf.mxu0  ;;  %v339_v5 = vpop.f32.mrf.mxu1 }
 0x10f   :  { %v380_v1 = vadd.f32 %v376_v58, %v229_v57  ;;  %v232_v2 = vadd.f32 %v228_v59, %v76_v54  ;;  %v226_v4 = vmul.f32 %v213_v41, %v189_v0  ;;  %v377_v11 = vmul.f32 %v364_v44, %v339_v5 }
 0x110   :  { %v404_v14 = vadd.f32 %v574_v7, %v382_v6 }
 0x111   :  { %v402_v8 = vadd.f32 %v574_v7, %v380_v1  ;;  %v383_v9 = vadd.f32 %v379_v3, %v232_v2  ;;  %v230_v10 = vadd.f32 %v226_v4, %v74_v63 }
 0x113   :  { %v405_v12 = vadd.f32 %v574_v7, %v383_v9  ;;  %v381_v13 = vadd.f32 %v377_v11, %v230_v10  ;;  %709 = vtanh.f32 %v402_v8 }
 0x115   :  { %v403_v15 = vadd.f32 %v574_v7, %v381_v13  ;;  %711 = vtanh.f32 %v405_v12 }
 0x117   :  { %713 = vtanh.f32 %v403_v15 }
 0x118   :  { %715 = vtanh.f32 %v404_v14 }
 0x120   :  { %v710_v16 = vpop.eup %709 }
 0x122   :  { %v712_v17 = vpop.eup %711 }
 0x124   :  { %v714_v18 = vpop.eup %713 }
 0x125   :  { %v716_v19 = vpop.eup %715  ;;  %v410_v20 = vpack.c.bf16 %v714_v18, %v710_v16 }
 0x126   :  { %v411_v21 = vpack.c.bf16 %v712_v17, %v716_v19 }
 0x127   :  { %670 = vmatprep.mubr.bf16.mxu0 %v410_v20 }
 0x128   :  { %671 = vmatmul.mubr.bf16.vlgmr.msra.gmra.mxu0 %v411_v21 }
 0x1e8   :  { %v672_v23 = vpop.f32.mrf.mxu0 }
 0x1e9   :  { %v526_v24 = vadd.f32 %v672_v23, %v575_v22 }
 0x1ea   :  { %v517_v25 = vpop.f32.mrf.mxu0 }
 0x1eb   :  { %534 = vst [vmem:[#allocation9 + $0x10] sm:$0xff] %v526_v24  ;;  %v518_v26 = vadd.f32 %v575_v22, %v517_v25 }
 0x1ec   :  { %v673_v27 = vpop.f32.mrf.mxu0 }
 0x1ed   :  { %532 = vst [vmem:[#allocation9] sm:$0xff] %v518_v26  ;;  %v529_v28 = vadd.f32 %v673_v27, %v575_v22 }
 0x1ee   :  { %v520_v29 = vpop.f32.mrf.mxu0 }
 0x1ef   :  { %535 = vst [vmem:[#allocation9 + $0x18] sm:$0xff] %v529_v28  ;;  %v521_v30 = vadd.f32 %v575_v22, %v520_v29 }
 0x1f1   :  { %533 = vst [vmem:[#allocation9 + $0x8] sm:$0xff] %v521_v30 }
 0x1f2   :  { %788 = shalt.err (!%p785_p5)
}
 0x1f3   :  { %547 = dma.vmem_to_hbm [thread:$0]  %s542_s27, 512, %s934_s7, [#allocation5], %s805_s29, %s805_s29, %s806_s30  }
 0x1f4   :  { %801 = dma.done.wait [#allocation5], 512  }
 0x1f5   :  { %802 = vsyncadd [#allocation5], 4294966784 }
 0x1f6   :  { %551 = vsyncpa [#allocation4], 1 }
 0x1f7   :  { %552 = vsyncpa [#allocation7], 1 }
 0x1f8   :  { %553 = vsyncpa [#allocation5], 1 }

</bundles_post_ra>
